<compile_context>
chip_gen: v7x
topology: tpu7x:2x2x1
jax: 0.10.0
libtpu: 0.0.40
codegen_flags: <defaults>
</compile_context>

<pallas_src>
import math

import jax
import jax.numpy as jnp
from jax import lax
from jax.experimental import pallas as pl
from jax.experimental.pallas import tpu as pltpu

_LN_EPS = 1e-5
_MIB = 1 << 20


def _nbytes(shape, dtype):
    return math.prod(shape) * jnp.dtype(dtype).itemsize


def _vmem_limit(block_bytes):
    # Explicit scoped-VMEM budget: 2x for double buffering + headroom for f32 intermediates,
    # clamped to [32 MiB, 64 MiB] so the request is valid on v5e/v6e (128 MiB physical) and
    # v7x (64 MiB physical) alike.  Raise the upper clamp on v5e/v6e for very large shapes.
    est = 2 * block_bytes + 8 * _MIB
    return int(min(max(est, 32 * _MIB), 64 * _MIB))


# ---------------------------------------------------------------------------
# Kernel 1: LayerNorm(x) + stacked QKV projection   (one (batch, seq-tile) per step)
# ---------------------------------------------------------------------------
def _ln_qkv_kernel(x_ref, w_ref, bias_ref, g_ref, b_ref, q_ref, k_ref, v_ref):
    D = x_ref.shape[-1]

    # LayerNorm in f32 for stability.
    x = x_ref[...].astype(jnp.float32)                      # (s_blk, D)
    mu = jnp.mean(x, axis=-1, keepdims=True)
    xc = x - mu
    var = jnp.mean(xc * xc, axis=-1, keepdims=True)
    xn = xc * lax.rsqrt(var + _LN_EPS)
    xn = xn * g_ref[...].astype(jnp.float32) + b_ref[...].astype(jnp.float32)
    xn_c = xn.astype(x_ref.dtype)

    # One stacked matmul: (s_blk, D) @ (D, 3D) + per-batch bias (task proj / scale folded in).
    qkv = (jnp.dot(xn_c, w_ref[...], preferred_element_type=jnp.float32)
           + bias_ref[...].astype(jnp.float32))              # (s_blk, 3D)

    q_ref[...] = qkv[:, :D].astype(q_ref.dtype)
    k_ref[...] = qkv[:, D:2 * D].astype(k_ref.dtype)
    v_ref[...] = qkv[:, 2 * D:].astype(v_ref.dtype)


def _ln_qkv(x, w_qkv, bias_qkv, gamma, beta, *, s_block):
    B, S, D = x.shape
    s_blk = min(s_block, S)
    assert S % s_blk == 0, "seq_len must divide by the pre-kernel tile size"
    n_s = S // s_blk

    xmap = lambda b, i: (b, i, 0)
    blk_bytes = (4 * _nbytes((s_blk, D), x.dtype)            # x tile + q/k/v tiles
                 + _nbytes((D, 3 * D), w_qkv.dtype)
                 + _nbytes((1, 3 * D), bias_qkv.dtype)
                 + 2 * _nbytes((1, D), gamma.dtype))

    return pl.pallas_call(
        _ln_qkv_kernel,
        grid=(B, n_s),
        in_specs=[
            pl.BlockSpec((None, s_blk, D), xmap),             # x
            pl.BlockSpec((D, 3 * D), lambda b, i: (0, 0)),    # stacked W_qkv
            pl.BlockSpec((None, 1, 3 * D), lambda b, i: (b, 0, 0)),  # per-batch bias
            pl.BlockSpec((1, D), lambda b, i: (0, 0)),        # gamma
            pl.BlockSpec((1, D), lambda b, i: (0, 0)),        # beta
        ],
        out_specs=[pl.BlockSpec((None, s_blk, D), xmap)] * 3,
        out_shape=tuple(jax.ShapeDtypeStruct((B, S, D), x.dtype) for _ in range(3)),
        compiler_params=pltpu.CompilerParams(
            dimension_semantics=("parallel", "parallel"),
            vmem_limit_bytes=_vmem_limit(blk_bytes)),
    )(x, w_qkv, bias_qkv, gamma, beta)


# ---------------------------------------------------------------------------
# Kernel 2: attention (all heads) + out-projection + residual + LayerNorm
#           (one (batch, q-tile) per step; K/V full-sequence resident)
# ---------------------------------------------------------------------------
def _make_attn_out_kernel(H, Dh, has_mask):
    def body(x_ref, q_ref, k_ref, v_ref, mask_ref, wo_ref, bo_ref, g_ref, b_ref, o_ref):
        cdt = q_ref.dtype
        q = q_ref[...]                               # (q_blk, D); 1/sqrt(Dh) already folded in
        k = k_ref[...]                               # (Lk, D)
        v = v_ref[...]                               # (Lk, D)
        mask = mask_ref[...].astype(jnp.float32) if mask_ref is not None else None

        acc = None
        for h in range(H):                           # static unrolled head loop (lane slices)
            lo = h * Dh
            qh = q[:, lo:lo + Dh]
            kh = k[:, lo:lo + Dh]
            vh = v[:, lo:lo + Dh]
            # scores: contract last dims directly (no HBM-side relayout of K)
            s = jnp.einsum("qd,kd->qk", qh, kh, preferred_element_type=jnp.float32)
            if mask is not None:
                s = s + mask                          # additive float mask (PyTorch semantics)
            m = jnp.max(s, axis=-1, keepdims=True)
            e = jnp.exp(s - m)
            denom = jnp.sum(e, axis=-1, keepdims=True)
            ctx = jnp.einsum("qk,kd->qd", e.astype(cdt), vh,
                             preferred_element_type=jnp.float32)
            # deferred softmax normalization: scale the small (q_blk, Dh) context instead of
            # the (q_blk, Lk) probabilities; approx reciprocal goes to the EUP slot.
            ctx = ctx * pl.reciprocal(denom, approx=True)
            # fused out-projection: accumulate per-head rows of wo
            part = jnp.dot(ctx.astype(cdt), wo_ref[lo:lo + Dh, :],
                           preferred_element_type=jnp.float32)
            acc = part if acc is None else acc + part

        g = g_ref[...].astype(jnp.float32)
        b = b_ref[...].astype(jnp.float32)

        # Residual: recompute LayerNorm(x) for this q-tile (cheaper than an xn HBM round trip).
        x = x_ref[...].astype(jnp.float32)
        mu = jnp.mean(x, axis=-1, keepdims=True)
        xc = x - mu
        var = jnp.mean(xc * xc, axis=-1, keepdims=True)
        xn = xc * lax.rsqrt(var + _LN_EPS) * g + b

        # out-proj bias + residual + final LayerNorm (same gamma/beta as the first LN)
        y = acc + bo_ref[...].astype(jnp.float32) + xn
        mu2 = jnp.mean(y, axis=-1, keepdims=True)
        yc = y - mu2
        var2 = jnp.mean(yc * yc, axis=-1, keepdims=True)
        out = yc * lax.rsqrt(var2 + _LN_EPS) * g + b
        # TODO(synk): final nn.Dropout treated as eval-mode identity.
        o_ref[...] = out.astype(o_ref.dtype)

    if has_mask:
        def kernel(x_ref, q_ref, k_ref, v_ref, mask_ref, wo_ref, bo_ref, g_ref, b_ref, o_ref):
            body(x_ref, q_ref, k_ref, v_ref, mask_ref, wo_ref, bo_ref, g_ref, b_ref, o_ref)
    else:
        def kernel(x_ref, q_ref, k_ref, v_ref, wo_ref, bo_ref, g_ref, b_ref, o_ref):
            body(x_ref, q_ref, k_ref, v_ref, None, wo_ref, bo_ref, g_ref, b_ref, o_ref)
    return kernel


def _attn_out(x, q, k, v, mask, wo, bo, gamma, beta, *, num_heads, q_block):
    B, S, D = x.shape
    H = num_heads
    Dh = D // H
    q_blk = min(q_block, S)
    assert S % q_blk == 0, "seq_len must divide by the q tile size"
    n_q = S // q_blk

    tile_spec = pl.BlockSpec((None, q_blk, D), lambda b, i: (b, i, 0))
    kv_spec = pl.BlockSpec((None, S, D), lambda b, i: (b, 0, 0))
    const2 = lambda b, i: (0, 0)

    in_specs = [tile_spec, tile_spec, kv_spec, kv_spec]
    args = [x, q, k, v]
    if mask is not None:
        assert mask.shape == (S, S)
        in_specs.append(pl.BlockSpec((q_blk, S), lambda b, i: (i, 0)))
        args.append(mask)                                   # streamed in its own dtype
    in_specs += [pl.BlockSpec((D, D), const2), pl.BlockSpec((1, D), const2),
                 pl.BlockSpec((1, D), const2), pl.BlockSpec((1, D), const2)]
    args += [wo, bo, gamma, beta]

    blk_bytes = (3 * _nbytes((q_blk, D), x.dtype)            # x tile, q tile, out tile
                 + 2 * _nbytes((S, D), x.dtype)              # K, V resident (full Lk)
                 + _nbytes((D, D), wo.dtype)
                 + 3 * _nbytes((1, D), bo.dtype)
                 + (_nbytes((q_blk, S), mask.dtype) if mask is not None else 0)
                 + 2 * 4 * q_blk * S)                        # one head's f32 score/exp live

    kernel = _make_attn_out_kernel(H, Dh, mask is not None)
    return pl.pallas_call(
        kernel,
        grid=(B, n_q),
        in_specs=in_specs,
        out_specs=tile_spec,
        out_shape=jax.ShapeDtypeStruct((B, S, D), x.dtype),
        compiler_params=pltpu.CompilerParams(
            dimension_semantics=("parallel", "parallel"),
            vmem_limit_bytes=_vmem_limit(blk_bytes)),
    )(*args)


# ---------------------------------------------------------------------------
# Full forward
# ---------------------------------------------------------------------------
def task_specific_transformer_forward(params, x, task_embedding, *, num_heads, mask=None,
                                       q_block=256, s_block=256):
    B, S, D = x.shape
    H = num_heads
    Dh = D // H
    assert H * Dh == D
    cdt = x.dtype
    scale = 1.0 / math.sqrt(Dh)

    # --- parameter prep: cast weights once to the activation dtype (consistent MXU operands),
    #     stack QKV, fold the softmax scale and the task projection into weights / bias. ---
    wq = params["wq"].astype(cdt)
    wk = params["wk"].astype(cdt)
    wv = params["wv"].astype(cdt)
    wo = params["wo"].astype(cdt)
    gamma = params["gamma"].astype(cdt).reshape(1, D)
    beta = params["beta"].astype(cdt).reshape(1, D)
    bo = params["bo"].astype(cdt).reshape(1, D)

    w_qkv = jnp.concatenate([wq * jnp.asarray(scale, cdt), wk, wv], axis=1)     # (D, 3D)

    # q = (LN(x) + tp) @ wq + bq == LN(x) @ wq + (tp @ wq + bq): fold the task projection into
    # a per-batch q bias (tiny B x D work once per call, not a per-grid-step matmul).
    tp = (task_embedding.astype(cdt) @ params["w_task"].astype(cdt)
          + params["b_task"].astype(cdt).reshape(1, D))                          # (B, D)
    q_bias = (tp @ wq + params["bq"].astype(cdt).reshape(1, D)) * jnp.asarray(scale, cdt)
    k_bias = jnp.broadcast_to(params["bk"].astype(cdt).reshape(1, D), (B, D))
    v_bias = jnp.broadcast_to(params["bv"].astype(cdt).reshape(1, D), (B, D))
    bias_qkv = jnp.concatenate([q_bias, k_bias, v_bias], axis=-1).reshape(B, 1, 3 * D)

    q, k, v = _ln_qkv(x, w_qkv, bias_qkv, gamma, beta, s_block=s_block)
    return _attn_out(x, q, k, v, mask, wo, bo, gamma, beta,
                     num_heads=H, q_block=q_block)


# ---------------------------------------------------------------------------
# Pure-JAX reference (same math, XLA path)
# ---------------------------------------------------------------------------
def reference_forward(params, x, task_embedding, num_heads, mask=None):
    def ln(t):
        mu = jnp.mean(t, axis=-1, keepdims=True)
        var = jnp.mean((t - mu) ** 2, axis=-1, keepdims=True)
        return (t - mu) * lax.rsqrt(var + _LN_EPS) * params["gamma"] + params["beta"]

    B, S, D = x.shape
    H = num_heads
    Dh = D // H

    xn = ln(x)
    tp = task_embedding @ params["w_task"] + params["b_task"]          # (B, D)
    q_in = xn + tp[:, None, :]
    q = q_in @ params["wq"] + params["bq"]
    k = xn @ params["wk"] + params["bk"]
    v = xn @ params["wv"] + params["bv"]

    def split(t):
        return t.reshape(B, S, H, Dh).transpose(0, 2, 1, 3)

    qh, kh, vh = split(q), split(k), split(v)
    scores = jnp.einsum("bhqd,bhkd->bhqk", qh * (1.0 / math.sqrt(Dh)), kh)
    if mask is not None:
        scores = scores + mask
    p = jax.nn.softmax(scores, axis=-1)
    ctx = jnp.einsum("bhqk,bhkd->bhqd", p, vh).transpose(0, 2, 1, 3).reshape(B, S, D)
    return ln(ctx @ params["wo"] + params["bo"] + xn)


if __name__ == "__main__":
    B, S, D_MODEL, D_TASK, HEADS = 2, 8, 32, 16, 4
    f32 = jnp.float32

    key = jax.random.PRNGKey(0)
    ks = jax.random.split(key, 14)

    def nrm(k, shape, s=0.2):
        return (s * jax.random.normal(k, shape)).astype(f32)

    params = {
        "w_task": nrm(ks[0], (D_TASK, D_MODEL)),
        "b_task": nrm(ks[1], (1, D_MODEL), 0.1),
        "gamma":  (1.0 + 0.1 * jax.random.normal(ks[2], (1, D_MODEL))).astype(f32),
        "beta":   nrm(ks[3], (1, D_MODEL), 0.1),
        "wq": nrm(ks[4], (D_MODEL, D_MODEL)), "bq": nrm(ks[5], (1, D_MODEL), 0.1),
        "wk": nrm(ks[6], (D_MODEL, D_MODEL)), "bk": nrm(ks[7], (1, D_MODEL), 0.1),
        "wv": nrm(ks[8], (D_MODEL, D_MODEL)), "bv": nrm(ks[9], (1, D_MODEL), 0.1),
        "wo": nrm(ks[10], (D_MODEL, D_MODEL)), "bo": nrm(ks[11], (1, D_MODEL), 0.1),
    }
    x = jax.random.normal(ks[12], (B, S, D_MODEL), dtype=f32)
    task_emb = jax.random.normal(ks[13], (B, D_TASK), dtype=f32)

    # Tolerance accounts for approx-reciprocal softmax denominator + rsqrt differences.
    TOL = dict(atol=5e-3, rtol=5e-3)

    # 1) No mask (module default).
    out = task_specific_transformer_forward(params, x, task_emb, num_heads=HEADS)
    out = jax.block_until_ready(out)
    ref = reference_forward(params, x, task_emb, HEADS)
    assert out.shape == (B, S, D_MODEL)
    assert jnp.allclose(out, ref, **TOL), "no-mask output mismatch"

    # 2) Additive float attention mask (PyTorch float attn_mask semantics), causal.
    causal = jnp.where(jnp.tril(jnp.ones((S, S), dtype=bool)), 0.0,
                       jnp.float32(-1e9)).astype(f32)
    out_m = task_specific_transformer_forward(params, x, task_emb,
                                              num_heads=HEADS, mask=causal)
    out_m = jax.block_until_ready(out_m)
    ref_m = reference_forward(params, x, task_emb, HEADS, mask=causal)
    assert jnp.allclose(out_m, ref_m, **TOL), "masked output mismatch"

    print("KERNEL_OK")
</pallas_src>

<mosaic_0001>
module attributes {stable_mosaic.version = 11 : i64} {
  func.func @_ln_qkv_kernel(%arg0: i32, %arg1: i32, %arg2: memref<1x8x32xf32, #tpu.memory_space<vmem>>, %arg3: memref<32x96xf32, #tpu.memory_space<vmem>>, %arg4: memref<1x1x96xf32, #tpu.memory_space<vmem>>, %arg5: memref<1x32xf32, #tpu.memory_space<vmem>>, %arg6: memref<1x32xf32, #tpu.memory_space<vmem>>, %arg7: memref<1x8x32xf32, #tpu.memory_space<vmem>>, %arg8: memref<1x8x32xf32, #tpu.memory_space<vmem>>, %arg9: memref<1x8x32xf32, #tpu.memory_space<vmem>>) attributes {dimension_semantics = [#tpu.dimension_semantics<parallel>, #tpu.dimension_semantics<parallel>], iteration_bounds = array<i64: 2, 1>, scalar_prefetch = 0 : i64, scratch_operands = 0 : i64, tpu.core_type = #tpu.core_type<tc>, window_params = [{transform_indices = @transform_0, window_bounds = array<i64: 1, 8, 32>}, {pipeline_mode = #tpu.pipeline_mode<synchronous>, transform_indices = @transform_1, window_bounds = array<i64: 32, 96>}, {transform_indices = @transform_2, window_bounds = array<i64: 1, 1, 96>}, {pipeline_mode = #tpu.pipeline_mode<synchronous>, transform_indices = @transform_3, window_bounds = array<i64: 1, 32>}, {pipeline_mode = #tpu.pipeline_mode<synchronous>, transform_indices = @transform_4, window_bounds = array<i64: 1, 32>}, {transform_indices = @transform_5, window_bounds = array<i64: 1, 8, 32>}, {transform_indices = @transform_6, window_bounds = array<i64: 1, 8, 32>}, {transform_indices = @transform_7, window_bounds = array<i64: 1, 8, 32>}]} {
    %c0 = arith.constant 0 : index
    %c0_0 = arith.constant 0 : index
    %c0_1 = arith.constant 0 : index
    %0 = vector.load %arg2[%c0, %c0_0, %c0_1] : memref<1x8x32xf32, #tpu.memory_space<vmem>>, vector<1x8x32xf32>
    %1 = vector.shape_cast %0 : vector<1x8x32xf32> to vector<8x32xf32>
    %cst = arith.constant dense<0.000000e+00> : vector<8xf32>
    %2 = vector.multi_reduction <add>, %1, %cst [1] : vector<8x32xf32> to vector<8xf32>
    %3 = vector.shape_cast %2 : vector<8xf32> to vector<8x1xf32>
    %cst_2 = arith.constant 3.200000e+01 : f32
    %4 = vector.broadcast %cst_2 : f32 to vector<8x1xf32>
    %5 = arith.divf %3, %4 : vector<8x1xf32>
    %6 = vector.broadcast %5 : vector<8x1xf32> to vector<8x32xf32>
    %7 = arith.subf %1, %6 : vector<8x32xf32>
    %8 = arith.mulf %7, %7 : vector<8x32xf32>
    %cst_3 = arith.constant dense<0.000000e+00> : vector<8xf32>
    %9 = vector.multi_reduction <add>, %8, %cst_3 [1] : vector<8x32xf32> to vector<8xf32>
    %10 = vector.shape_cast %9 : vector<8xf32> to vector<8x1xf32>
    %cst_4 = arith.constant 3.200000e+01 : f32
    %11 = vector.broadcast %cst_4 : f32 to vector<8x1xf32>
    %12 = arith.divf %10, %11 : vector<8x1xf32>
    %cst_5 = arith.constant 9.99999974E-6 : f32
    %13 = vector.broadcast %cst_5 : f32 to vector<8x1xf32>
    %14 = arith.addf %12, %13 : vector<8x1xf32>
    %15 = math.rsqrt %14 : vector<8x1xf32>
    %16 = vector.broadcast %15 : vector<8x1xf32> to vector<8x32xf32>
    %17 = arith.mulf %7, %16 : vector<8x32xf32>
    %c0_6 = arith.constant 0 : index
    %c0_7 = arith.constant 0 : index
    %18 = vector.load %arg5[%c0_6, %c0_7] : memref<1x32xf32, #tpu.memory_space<vmem>>, vector<1x32xf32>
    %19 = vector.broadcast %18 : vector<1x32xf32> to vector<8x32xf32>
    %20 = arith.mulf %17, %19 : vector<8x32xf32>
    %c0_8 = arith.constant 0 : index
    %c0_9 = arith.constant 0 : index
    %21 = vector.load %arg6[%c0_8, %c0_9] : memref<1x32xf32, #tpu.memory_space<vmem>>, vector<1x32xf32>
    %22 = vector.broadcast %21 : vector<1x32xf32> to vector<8x32xf32>
    %23 = arith.addf %20, %22 : vector<8x32xf32>
    %c0_10 = arith.constant 0 : index
    %c0_11 = arith.constant 0 : index
    %24 = vector.load %arg3[%c0_10, %c0_11] : memref<32x96xf32, #tpu.memory_space<vmem>>, vector<32x96xf32>
    %cst_12 = arith.constant dense<0.000000e+00> : vector<8x96xf32>
    %25 = tpu.matmul %23, %24, %cst_12 {dimension_numbers = #tpu.dot_dimension_numbers<[1], [0], [0], [1], [0, 0, 1, 1], [], []>} : vector<8x32xf32>, vector<32x96xf32>, vector<8x96xf32> -> vector<8x96xf32>
    %c0_13 = arith.constant 0 : index
    %c0_14 = arith.constant 0 : index
    %c0_15 = arith.constant 0 : index
    %26 = vector.load %arg4[%c0_13, %c0_14, %c0_15] : memref<1x1x96xf32, #tpu.memory_space<vmem>>, vector<1x1x96xf32>
    %27 = vector.shape_cast %26 : vector<1x1x96xf32> to vector<1x96xf32>
    %28 = vector.broadcast %27 : vector<1x96xf32> to vector<8x96xf32>
    %29 = arith.addf %25, %28 : vector<8x96xf32>
    %30 = vector.extract_strided_slice %29 {offsets = [0, 0], sizes = [8, 32], strides = [1, 1]} : vector<8x96xf32> to vector<8x32xf32>
    %c0_16 = arith.constant 0 : index
    %c0_17 = arith.constant 0 : index
    %c0_18 = arith.constant 0 : index
    %31 = vector.load %arg7[%c0_16, %c0_17, %c0_18] : memref<1x8x32xf32, #tpu.memory_space<vmem>>, vector<1x8x32xf32>
    %32 = vector.shape_cast %31 : vector<1x8x32xf32> to vector<8x32xf32>
    %33 = vector.shape_cast %30 : vector<8x32xf32> to vector<1x8x32xf32>
    tpu.vector_store %arg7[%c0_16, %c0_17, %c0_18], %33 {strides = array<i32>} : memref<1x8x32xf32, #tpu.memory_space<vmem>>, vector<1x8x32xf32>,
    %34 = vector.extract_strided_slice %29 {offsets = [0, 32], sizes = [8, 32], strides = [1, 1]} : vector<8x96xf32> to vector<8x32xf32>
    %c0_19 = arith.constant 0 : index
    %c0_20 = arith.constant 0 : index
    %c0_21 = arith.constant 0 : index
    %35 = vector.load %arg8[%c0_19, %c0_20, %c0_21] : memref<1x8x32xf32, #tpu.memory_space<vmem>>, vector<1x8x32xf32>
    %36 = vector.shape_cast %35 : vector<1x8x32xf32> to vector<8x32xf32>
    %37 = vector.shape_cast %34 : vector<8x32xf32> to vector<1x8x32xf32>
    tpu.vector_store %arg8[%c0_19, %c0_20, %c0_21], %37 {strides = array<i32>} : memref<1x8x32xf32, #tpu.memory_space<vmem>>, vector<1x8x32xf32>,
    %38 = vector.extract_strided_slice %29 {offsets = [0, 64], sizes = [8, 32], strides = [1, 1]} : vector<8x96xf32> to vector<8x32xf32>
    %c0_22 = arith.constant 0 : index
    %c0_23 = arith.constant 0 : index
    %c0_24 = arith.constant 0 : index
    %39 = vector.load %arg9[%c0_22, %c0_23, %c0_24] : memref<1x8x32xf32, #tpu.memory_space<vmem>>, vector<1x8x32xf32>
    %40 = vector.shape_cast %39 : vector<1x8x32xf32> to vector<8x32xf32>
    %41 = vector.shape_cast %38 : vector<8x32xf32> to vector<1x8x32xf32>
    tpu.vector_store %arg9[%c0_22, %c0_23, %c0_24], %41 {strides = array<i32>} : memref<1x8x32xf32, #tpu.memory_space<vmem>>, vector<1x8x32xf32>,
    return
  }
  func.func @transform_0(%arg0: i32, %arg1: i32) -> (i32, i32, i32) {
    %c0_i32 = arith.constant 0 : i32
    %c0_i32_0 = arith.constant 0 : i32
    return %arg0, %arg1, %c0_i32 : i32, i32, i32
  }
  func.func @transform_1(%arg0: i32, %arg1: i32) -> (i32, i32) {
    %c0_i32 = arith.constant 0 : i32
    %c0_i32_0 = arith.constant 0 : i32
    %c0_i32_1 = arith.constant 0 : i32
    return %c0_i32, %c0_i32_0 : i32, i32
  }
  func.func @transform_2(%arg0: i32, %arg1: i32) -> (i32, i32, i32) {
    %c0_i32 = arith.constant 0 : i32
    %c0_i32_0 = arith.constant 0 : i32
    %c0_i32_1 = arith.constant 0 : i32
    return %arg0, %c0_i32, %c0_i32_0 : i32, i32, i32
  }
  func.func @transform_3(%arg0: i32, %arg1: i32) -> (i32, i32) {
    %c0_i32 = arith.constant 0 : i32
    %c0_i32_0 = arith.constant 0 : i32
    %c0_i32_1 = arith.constant 0 : i32
    return %c0_i32, %c0_i32_0 : i32, i32
  }
  func.func @transform_4(%arg0: i32, %arg1: i32) -> (i32, i32) {
    %c0_i32 = arith.constant 0 : i32
    %c0_i32_0 = arith.constant 0 : i32
    %c0_i32_1 = arith.constant 0 : i32
    return %c0_i32, %c0_i32_0 : i32, i32
  }
  func.func @transform_5(%arg0: i32, %arg1: i32) -> (i32, i32, i32) {
    %c0_i32 = arith.constant 0 : i32
    %c0_i32_0 = arith.constant 0 : i32
    return %arg0, %arg1, %c0_i32 : i32, i32, i32
  }
  func.func @transform_6(%arg0: i32, %arg1: i32) -> (i32, i32, i32) {
    %c0_i32 = arith.constant 0 : i32
    %c0_i32_0 = arith.constant 0 : i32
    return %arg0, %arg1, %c0_i32 : i32, i32, i32
  }
  func.func @transform_7(%arg0: i32, %arg1: i32) -> (i32, i32, i32) {
    %c0_i32 = arith.constant 0 : i32
    %c0_i32_0 = arith.constant 0 : i32
    return %arg0, %arg1, %c0_i32 : i32, i32, i32
  }
}

</mosaic_0001>

<bundles_post_ra>
// kernel: tpu_custom_call.1
= control target key start
LH: loop header
LB: loop body
LE: loop exit
PB: predicated region body
PF: predicated region fallthrough
CT: control target
= control target key end

     0   :  { %s1410_s0 = inlined_call_operand.hbm [shape: f32[2,8,32], index: 0, kind: input, shape index: {}]   ;;  %s1411_s1 = inlined_call_operand.hbm [shape: f32[32,96], index: 1, kind: input, shape index: {}]   ;;  %s1412_s2 = inlined_call_operand.vmem [shape: f32[2,1,96], index: 2, kind: input, shape index: {}]   ;;  %s1413_s3 = inlined_call_operand.vmem [shape: f32[1,32], index: 3, kind: input, shape index: {}]   ;;  %s1414_s4 = inlined_call_operand.vmem [shape: f32[1,32], index: 4, kind: input, shape index: {}]   ;;  %s1415_s5 = inlined_call_operand.hbm [shape: f32[2,8,32], index: 5, kind: output, shape index: {0}]   ;;  %s1416_s6 = inlined_call_operand.hbm [shape: f32[2,8,32], index: 6, kind: output, shape index: {1}]   ;;  %s1417_s7 = inlined_call_operand.hbm [shape: f32[2,8,32], index: 7, kind: output, shape index: {2}]  }
   0x1   :  { %1423 = sst [smem:[#allocation16_spill]] %s1411_s1 }
   0x2   :  { %13 = vsyncpa [#allocation3], 0 }
   0x3   :  { %15 = vsyncpa [#allocation3 + $0x1], 0 }
   0x4   :  { %16 = vsyncpa [#allocation6], 0 }
   0x5   :  { %17 = vsyncpa [#allocation4], 0 }
   0x6   :  { %19 = vsyncpa [#allocation4 + $0x1], 0 }
   0x7   :  { %20 = vsyncpa [#allocation9], 0 }
   0x8   :  { %22 = vsyncpa [#allocation9 + $0x1], 0  ;;  %s1100_s24 = smov 0   ;;  %s1102_s25 = smov 0  }
   0x9   :  { %s1104_s26 = smov 0   ;;  %s1106_s27 = smov 0  }
   0xa   :  { %s1108_s28 = smov 0   ;;  %s1110_s29 = smov 0  }
   0xb LB: > { %s1131_s30 = sadd.s32 4294967295, %s1046_s29   ;;  %s1421_s8 = sadd.s32 4294967294, %s1046_s29   ;;  %s1046_s29 = sphi %s1110_s29, %s28_s29   ;;  %s1042_s28 = sphi %s1108_s28, %s1446_s28   ;;  %s1038_s27 = sphi %s1106_s27, %s1445_s27   ;;  %s1034_s26 = sphi %s1104_s26, %s1444_s26   ;;  %s1030_s25 = sphi %s1102_s25, %s1443_s25   ;;  %s1026_s24 = sphi %s1100_s24, %s1442_s24  }
   0xc   : > { %p62_p0 = scmp.ne.s32.totalorder %s1030_s25, %s1026_s24  ;;  %p1418_p1 = scmp.eq.s32.totalorder %s1131_s30, 0 }
   0xd   : > { %p183_p3 = scmp.eq.s32.totalorder %s1421_s8, 1  ;;  %p705_p5 = scmp.ge.s32.totalorder %s1046_s29, 1 }
   0xe   : > { %p1142_p4 = por %p1418_p1, %p62_p0  ;;  %p246_p7 = scmp.lt.s32.totalorder %s1046_s29, 3 }
   0xf   : > { %p1147_p6 = por %p183_p3, %p62_p0  ;;  %s1048_s12 = smov [#allocation5]  }
  0x10   : > { %s1424_s9 = scalar_select %p1142_p4, 1, 0 }
  0x11   : > { %s1425_s10 = scalar_select %p1147_p6, 1, 0 }
  0x12   : > { %p1152_p8 = pnand %p705_p5, %p246_p7  ;;  %s258_s13 = sshll.u32 %s1048_s12, 4  ;;  %s259_s13 = int_to_ptr.vmem [resolvable:$true] %s258_s13 }
  0x13   : > { %s40_s15 = sadd.s32 1, %s1042_s28  ;;  %s1428_s1 = sld [smem:[#allocation16_spill]] }
  0x14   : > { %s1426_s11 = scalar_select %p1152_p8, 1, 0 }
  0x15   : > { %p762_p9 = pneg %p1152_p8 }
  0x17   : > { %p1161_p11 = pnand %p762_p9, %p1418_p1 }
  0x19   : > { %s842_s18 = scalar_lea.hbm %s1428_s1, 512  ;;  %p844_p13 = pneg %p1161_p11 }
  0x1a   : > { %p843_p12 = scmp.ne.s32.totalorder %s1428_s1, %s842_s18  ;;  %p849_p5 = scmp.lt.u32.totalorder %s842_s18, %s1428_s1 }
  0x1c   : > { %p845_p0 = pnand %p844_p13, %p843_p12 }
  0x1e   : > { %p846_p3 = pneg %p845_p0 }
  0x20   : > { %p851_p7 = pnand %p849_p5, %p846_p3 }
  0x22   : > { %854 = shalt.err (!%p851_p7)
}
  0x23   : > { %s855_s23 = scalar_lea.vmem %s259_s13, 512  ;;  %p863_p2 = scmp.lt.s32.totalorder %s259_s13, %s259_s13 }
  0x24   : > { %p856_p9 = scmp.ne.s32.totalorder %s259_s13, %s855_s23  ;;  %p864_p6 = scmp.lt.s32.totalorder %s855_s23, %s855_s23 }
  0x26   : > { %p858_p10 = pnand %p856_p9, %p844_p13  ;;  %p865_p4 = por %p864_p6, %p863_p2 }
  0x28   : > { %p859_p1 = pneg %p858_p10 }
  0x2a   : > { %p866_p8 = pnand %p865_p4, %p859_p1 }
  0x2c   : > { %869 = shalt.err (!%p866_p8)
}
  0x2d   : > { %s1049_s12 = smov 128   ;;  %s1050_s16 = smov 8  }
  0x2e   : > { %765 = dma.hbm_to_vmem [thread:$0]  (!%p1161_p11), %s1428_s1, 512, %s259_s13, [#allocation6], %s1049_s12, %s1049_s12, %s1050_s16  }
  0x2f   : > { %p42_p1 = scmp.ge.s32.totalorder %s40_s15, 2  ;;  %s49_s19 = sadd.s32 1, %s1034_s26 }
  0x30   : > { %p56_p2 = scmp.ne.s32.totalorder %s1034_s26, %s1030_s25  ;;  %p57_p4 = scmp.eq.s32.totalorder %s1046_s29, 0 }
  0x31   : > { %s1448_s15 = smov (%p42_p1, %s40_s15), 0  ;;  %p1431_p8 = scmp.eq.s32.totalorder %s1131_s30, 1 }
  0x32   : > { %1429 = sst [smem:[#allocation15_spill]] %s1448_s15  ;;  %p1188_p6 = por %p57_p4, %p56_p2 }
  0x33   : > { %p1194_p10 = por %p1431_p8, %p56_p2  ;;  %s44_s14 = ssub.s32 %s1042_s28, %s1448_s15 }
  0x34   : > { %p781_p12 = scmp.lt.s32.totalorder %s1046_s29, 2  ;;  %p47_p11 = scmp.eq.s32.totalorder %s44_s14, 0 }
  0x35   : > { %s278_s13 = sand.u32 1, %s1034_s26   ;;  %s709_s12 = sshll.u32 %s1042_s28, 7 }
  0x36   : > { %s708_s22 = sshll.u32 %s278_s13, 3  ;;  %s1209_s18 = scalar_lea.hbm %s1410_s0, %s709_s12 }
  0x37   : > { %s1203_s23 = scalar_select %p47_p11, %s1034_s26, %s49_s19  }
  0x38   : > { %s282_s8 = scalar_lea.vmem [#allocation2], %s708_s22  ;;  %p1215_p13 = pnand %p781_p12, %p1188_p6 }
  0x39   : > { %s290_s1 = sshll.u32 %s282_s8, 4  ;;  %s279_s19 = scalar_lea.sflag [#allocation3], %s278_s13  ;;  %s1211_s1 = int_to_ptr.vmem [resolvable:$true] %s290_s1 }
  0x3a   : > { %s870_s15 = scalar_lea.hbm %s1209_s18, 128  ;;  %p872_p3 = pneg %p1215_p13 }
  0x3b   : > { %p871_p0 = scmp.ne.s32.totalorder %s1209_s18, %s870_s15  ;;  %s875_s12 = scalar_lea.hbm %s1410_s0, 256 }
  0x3c   : > { %p876_p9 = scmp.lt.u32.totalorder %s1209_s18, %s1410_s0  ;;  %p877_p1 = scmp.lt.u32.totalorder %s875_s12, %s870_s15 }
  0x3d   : > { %p873_p5 = pnand %p872_p3, %p871_p0  ;;  %p879_p4 = scmp.lt.u32.totalorder %s870_s15, %s1209_s18 }
  0x3e   : > { %p878_p2 = por %p877_p1, %p876_p9 }
  0x3f   : > { %p874_p7 = pneg %p873_p5 }
  0x40   : > { %p880_p6 = por %p879_p4, %p878_p2 }
  0x42   : > { %p881_p8 = pnand %p880_p6, %p874_p7 }
  0x44   : > { %884 = shalt.err (!%p881_p8)
}
  0x45   : > { %s885_s13 = scalar_lea.vmem %s1211_s1, 128  ;;  %s1051_s17 = smov [#allocation2]  }
  0x46   : > { %p886_p12 = scmp.ne.s32.totalorder %s1211_s1, %s885_s13  ;;  %s890_s22 = sshll.u32 %s1051_s17, 4  ;;  %s891_s22 = int_to_ptr.vmem [resolvable:$false] %s890_s22 }
  0x47   : > { %s892_s8 = scalar_lea.vmem %s891_s22, 256  ;;  %p893_p5 = scmp.lt.s32.totalorder %s1211_s1, %s891_s22 }
  0x48   : > { %p888_p11 = pnand %p886_p12, %p872_p3  ;;  %p894_p9 = scmp.lt.s32.totalorder %s892_s8, %s885_s13 }
  0x4a   : > { %p889_p0 = pneg %p888_p11  ;;  %p895_p1 = por %p894_p9, %p893_p5 }
  0x4c   : > { %p896_p2 = pnand %p895_p1, %p889_p0 }
  0x4e   : > { %899 = shalt.err (!%p896_p2)
}
  0x4f   : > { %769 = dma.hbm_to_vmem [thread:$0]  (!%p1215_p13), %s1209_s18, 128, %s1211_s1, %s279_s19  }
  0x50   : > { %p1434_p7 = scmp.ne.s32.totalorder %s1426_s11, 0 }
  0x51   : > { %s1247_s15 = sand.u32 (!%p1434_p7), 1, %s1030_s25   ;;  %p1435_p3 = scmp.ne.s32.totalorder (!%p1434_p7), %s1424_s9, 0 }
  0x52   : > { %305 = sbr.rel (%p1434_p7) target bundleno = 773 (0x305), region = 40  ;;  %s1250_s12 = sshll.u32 (!%p1434_p7), %s1247_s15, 3 }
  0x53   : > { %s308_s20 = scalar_lea.sflag (!%p1434_p7), [#allocation3], %s1247_s15  ;;  %s311_s16 = scalar_lea.vmem (!%p1434_p7), [#allocation2], %s1250_s12 }
  0x59   : > { %1009 = dma.done.wait (%p1435_p3), %s308_s20, 128  }
  0x5a   : > { %1011 = vsyncadd (%p1435_p3), %s308_s20, 4294967168  ;;  %p1436_p13 = scmp.eq.s32.totalorder %s1131_s30, 0 }
  0x5c   : > { %1013 = dma.done.wait (%p1436_p13), [#allocation6], 512   ;;  %p1437_p4 = pmov %p1436_p13 }
  0x5d   : > { %vm363_vm0 = vcmask 261120   ;;  %v362_v0 = vld [vmem:[%s311_s16] sm:$0xff]  ;;  %v394_v7 = vld [vmem:[#allocation5] sm:$0xff]  ;;  %v395_v8 = vld [vmem:[#allocation5 + $0x8] sm:$0xff]  ;;  %v1052_v10 = vmov 0.0|0.0   ;;  %vm1053_vm1 = vmmov 0  }
  0x5e   : > { %1015 = vsyncadd (%p1437_p4), [#allocation6], 4294966784  ;;  %v364_v1 = vsel %vm363_vm0, %v362_v0, 0.0  ;;  %v396_v9 = vld [vmem:[#allocation5 + $0x10] sm:$0xff]  ;;  %744 = vmatprep.subr.bf16.mxu0 %v1052_v10  ;;  %v745_v11 = vpack.c.bf16 %v395_v8, %v394_v7  ;;  %v397_v12 = vld [vmem:[#allocation5 + $0x18] sm:$0xff]  ;;  %v1054_v13 = vmov 0.0  }
  0x5f   : > { %365 = vadd.xlane.f32.xlu0 %v364_v1  ;;  %741 = vmatprep.mubr.msk.f32.mxu0 %vm1053_vm1, %v1054_v13  ;;  %v748_v14 = vpack.c.bf16 %v397_v12, %v396_v9  ;;  %v716_v19 = vld [vmem:[%s1413_s3] ss:$0 sm:$0xff]  ;;  %p359_p6 = scmp.lt.s32.totalorder %s1038_s27, 1  ;;  %s1277_s22 = sshll.u32 %s1038_s27, 7 }
  0x60   : > { %746 = vmatpush3.bf16.msra.mxu0 %v745_v11  ;;  %v717_v21 = vld [vmem:[%s1414_s4] ss:$0 sm:$0xff]  ;;  %s344_s8 = scalar_lea.vmem [#allocation7], %s1250_s12  ;;  %s1284_s9 = scalar_lea.hbm %s1415_s5, %s1277_s22 }
  0x61   : > { %747 = vmatprep.subr.bf16.mxu0 %v1052_v10  ;;  %s360_s14 = scalar_select %p359_p6, %s1038_s27, 1 }
  0x62   : > { %s513_s20 = sshll.u32 %s344_s8, 4  ;;  %s1055_s11 = smov 96   ;;  %s1286_s20 = int_to_ptr.vmem [resolvable:$true] %s513_s20 }
  0x63   : > { %s361_s17 = scalar_lea.vmem %s1412_s2, %s360_s14  ;;  %s489_s27 = scalar_lea.sflag [#allocation4], %s1247_s15 }
  0x64   : > { %749 = vmatpush3.bf16.msra.mxu0 %v748_v14  ;;  %v718_v24 = vld [vmem:[%s361_s17] ss:$0 sm:$0xff]  ;;  %s900_s18 = scalar_lea.vmem %s1286_s20, 128  ;;  %s1056_s14 = smov [#allocation7]  }
  0x65   : > { %p901_p8 = scmp.ne.s32.totalorder %s1286_s20, %s900_s18  ;;  %s904_s19 = sshll.u32 %s1056_s14, 4  ;;  %s905_s19 = int_to_ptr.vmem [resolvable:$false] %s904_s19 }
  0x66   : > { %s906_s13 = scalar_lea.vmem %s905_s19, 256  ;;  %p907_p0 = scmp.lt.s32.totalorder %s1286_s20, %s905_s19 }
  0x67   : > { %p902_p12 = pnand %p901_p8, %p1194_p10  ;;  %p908_p5 = scmp.lt.s32.totalorder %s906_s13, %s900_s18 }
  0x69   : > { %p903_p11 = pneg %p902_p12  ;;  %p909_p9 = por %p908_p5, %p907_p0 }
  0x6b   : > { %p910_p1 = pnand %p909_p9, %p903_p11 }
  0xec   : > { %v366_v2 = vpop.xlane.xlu0 %365 }
  0xed   : > { %v368_v3 = vmul.f32 0.03125, %v366_v2 }
  0xef   : > { %v369_v4 = vsub.f32 %v362_v0, %v368_v3 }
  0xf1   : > { %v370_v5 = vmul.f32 %v369_v4, %v369_v4 }
  0xf3   : > { %v371_v6 = vsel %vm363_vm0, %v370_v5, 0.0 }
  0xf4   : > { %372 = vadd.xlane.f32.xlu0 %v371_v6 }
 0x181   : > { %v373_v15 = vpop.xlane.xlu0 %372 }
 0x182   : > { %v374_v16 = vmul.f32 0.03125, %v373_v15 }
 0x184   : > { %v375_v17 = vadd.f32 1e-05, %v374_v16 }
 0x186   : > { %840 = vrsqrt.f32 %v375_v17 }
 0x190   : > { %v841_v18 = vpop.eup %840 }
 0x191   : > { %v377_v20 = vmul.f32 %v841_v18, %v369_v4 }
 0x193   : > { %v385_v22 = vmul.f32 %v716_v19, %v377_v20 }
 0x195   : > { %v393_v23 = vadd.f32 %v717_v21, %v385_v22 }
 0x197   : > { %742 = vmatmul.mubr.msk.f32.vlgmr.msra.gmra.mrb[0].mxu0 %vm363_vm0, %v393_v23 }
 0x26a   : > { %v474_v25 = vpop.f32.mrb[0].mxu0 }
 0x26b   : > { %v475_v26 = vadd.f32 %v718_v24, %v474_v25  ;;  %v743_v27 = vpop.f32.mrb[1].mxu0 }
 0x26d   : > { %480 = vrot.lane.b32.xlu1 %v475_v26, %s1055_s11  ;;  %478 = vst.msk [vmem:[%s344_s8] sm:$0xff] %vm363_vm0, %v475_v26 }
 0x26e   : > { %913 = shalt.err (!%p910_p1)
}
 0x26f   : > { %s914_s15 = scalar_lea.hbm %s1284_s9, 128  ;;  %s918_s16 = scalar_lea.hbm %s1415_s5, 256 }
 0x270   : > { %p915_p2 = scmp.ne.s32.totalorder %s1284_s9, %s914_s15  ;;  %p919_p13 = scmp.lt.u32.totalorder %s1284_s9, %s1415_s5 }
 0x271   : > { %p920_p4 = scmp.lt.u32.totalorder %s918_s16, %s914_s15  ;;  %p922_p8 = scmp.lt.u32.totalorder %s914_s15, %s1284_s9 }
 0x272   : > { %p916_p7 = pnand %p915_p2, %p1194_p10 }
 0x273   : > { %p921_p6 = por %p920_p4, %p919_p13 }
 0x274   : > { %p917_p3 = pneg %p916_p7 }
 0x275   : > { %p923_p12 = por %p922_p8, %p921_p6 }
 0x277   : > { %p924_p11 = pnand %p923_p12, %p917_p3 }
 0x279   : > { %927 = shalt.err (!%p924_p11)
}
 0x27a   : > { %756 = dma.vmem_to_hbm [thread:$0]  (%p1194_p10), %s1286_s20, 128, %s1284_s9, %s489_s27  }
 0x27b   : > { %s1057_s18 = smov 64   ;;  %s493_s14 = sand.u32 1, %s1131_s30  }
 0x27c   : > { %484 = vrot.lane.b32.xlu1 %v475_v26, %s1057_s18  ;;  %s351_s19 = scalar_lea.vmem [#allocation8], %s1250_s12  ;;  %s1317_s8 = scalar_lea.hbm %s1416_s6, %s1277_s22 }
 0x27d   : > { %s527_s13 = sshll.u32 %s351_s19, 4  ;;  %s358_s16 = scalar_lea.vmem [#allocation10], %s1250_s12  ;;  %s1319_s13 = int_to_ptr.vmem [resolvable:$true] %s527_s13 }
 0x27e   : > { %s1324_s1 = sshll.u32 %s358_s16, 4  ;;  %s1327_s30 = scalar_lea.sflag [#allocation9], %s493_s14  ;;  %s1358_s1 = int_to_ptr.vmem [resolvable:$true] %s1324_s1 }
 0x27f   : > { %s928_s20 = scalar_lea.vmem %s1319_s13, 128  ;;  %s1058_s9 = smov [#allocation8]  }
 0x280   : > { %p929_p0 = scmp.ne.s32.totalorder %s1319_s13, %s928_s20  ;;  %s932_s27 = sshll.u32 %s1058_s9, 4  ;;  %s933_s27 = int_to_ptr.vmem [resolvable:$false] %s932_s27 }
 0x281   : > { %s934_s11 = scalar_lea.vmem %s933_s27, 256  ;;  %p935_p1 = scmp.lt.s32.totalorder %s1319_s13, %s933_s27 }
 0x282   : > { %p930_p5 = pnand %p929_p0, %p1194_p10  ;;  %p936_p2 = scmp.lt.s32.totalorder %s934_s11, %s928_s20 }
 0x284   : > { %p931_p9 = pneg %p930_p5  ;;  %p937_p7 = por %p936_p2, %p935_p1 }
 0x286   : > { %p938_p3 = pnand %p937_p7, %p931_p9 }
 0x2df   : > { %v481_v28 = vpop.permute.xlu1 %480 }
 0x2e0   : > { %483 = vst.msk [vmem:[%s351_s19] sm:$0xff] %vm363_vm0, %v481_v28 }
 0x2e1   : > { %941 = shalt.err (!%p938_p3)
}
 0x2e2   : > { %s942_s18 = scalar_lea.hbm %s1317_s8, 128  ;;  %s946_s15 = scalar_lea.hbm %s1416_s6, 256 }
 0x2e3   : > { %p943_p13 = scmp.ne.s32.totalorder %s1317_s8, %s942_s18  ;;  %p947_p8 = scmp.lt.u32.totalorder %s1317_s8, %s1416_s6 }
 0x2e4   : > { %p948_p12 = scmp.lt.u32.totalorder %s946_s15, %s942_s18  ;;  %p950_p0 = scmp.lt.u32.totalorder %s942_s18, %s1317_s8 }
 0x2e5   : > { %p944_p4 = pnand %p943_p13, %p1194_p10 }
 0x2e6   : > { %p949_p11 = por %p948_p12, %p947_p8 }
 0x2e7   : > { %p945_p6 = pneg %p944_p4 }
 0x2e8   : > { %p951_p5 = por %p950_p0, %p949_p11 }
 0x2ea   : > { %p952_p9 = pnand %p951_p5, %p945_p6 }
 0x2ec   : > { %955 = shalt.err (!%p952_p9)
}
 0x2ed   : > { %757 = dma.vmem_to_hbm [thread:$0]  (%p1194_p10), %s1319_s13, 128, %s1317_s8, %s1327_s30  }
 0x2ee   : > { %s1355_s11 = scalar_lea.hbm %s1417_s7, %s1277_s22  ;;  %v485_v29 = vpop.permute.xlu1 %484  ;;  %s956_s18 = scalar_lea.vmem %s1358_s1, 128 }
 0x2ef   : > { %487 = vst.msk [vmem:[%s358_s16] sm:$0xff] %vm363_vm0, %v485_v29  ;;  %p957_p1 = scmp.ne.s32.totalorder %s1358_s1, %s956_s18  ;;  %s1059_s13 = smov [#allocation10]  }
 0x2f0   : > { %s960_s8 = sshll.u32 %s1059_s13, 4  ;;  %s961_s8 = int_to_ptr.vmem [resolvable:$false] %s960_s8 }
 0x2f1   : > { %p958_p2 = pnand %p957_p1, %p1194_p10  ;;  %s962_s14 = scalar_lea.vmem %s961_s8, 256 }
 0x2f2   : > { %p963_p3 = scmp.lt.s32.totalorder %s1358_s1, %s961_s8  ;;  %p964_p13 = scmp.lt.s32.totalorder %s962_s14, %s956_s18 }
 0x2f3   : > { %p959_p7 = pneg %p958_p2 }
 0x2f4   : > { %p965_p4 = por %p964_p13, %p963_p3 }
 0x2f6   : > { %p966_p6 = pnand %p965_p4, %p959_p7 }
 0x2f8   : > { %969 = shalt.err (!%p966_p6)
}
 0x2f9   : > { %s970_s12 = scalar_lea.hbm %s1355_s11, 128  ;;  %s974_s19 = scalar_lea.hbm %s1417_s7, 256 }
 0x2fa   : > { %p971_p8 = scmp.ne.s32.totalorder %s1355_s11, %s970_s12  ;;  %p975_p0 = scmp.lt.u32.totalorder %s1355_s11, %s1417_s7 }
 0x2fb   : > { %p976_p5 = scmp.lt.u32.totalorder %s974_s19, %s970_s12  ;;  %p978_p1 = scmp.lt.u32.totalorder %s970_s12, %s1355_s11 }
 0x2fc   : > { %p972_p12 = pnand %p971_p8, %p1194_p10 }
 0x2fd   : > { %p977_p9 = por %p976_p5, %p975_p0 }
 0x2fe   : > { %p973_p11 = pneg %p972_p12 }
 0x2ff   : > { %p979_p2 = por %p978_p1, %p977_p9 }
 0x301   : > { %p980_p7 = pnand %p979_p2, %p973_p11 }
 0x303   : > { %983 = shalt.err (!%p980_p7)
}
 0x304   : > { %758 = dma.vmem_to_hbm [thread:$0]  (%p1194_p10), %s1358_s1, 128, %s1355_s11, %s1327_s30  }
 0x305 PF: > { %s553_s9 = sand.u32 1, %s1026_s24   ;;  %p1438_p3 = scmp.ne.s32.totalorder %s1425_s10, 0 }
 0x306   : > { %p1439_p13 = scmp.ge.s32.totalorder %s1046_s29, 2  ;;  %s554_s20 = scalar_lea.sflag [#allocation4], %s553_s9 }
 0x308   : > { %p771_p4 = pnand %p1439_p13, %p1438_p3 }
 0x30a   : > { %1017 = dma.done.wait (!%p771_p4), %s554_s20, 128  }
 0x30b   : > { %1019 = vsyncadd (!%p771_p4), %s554_s20, 4294967168  ;;  %s1440_s27 = sadd.s32 4294967294, %s1046_s29  }
 0x30c   : > { %s562_s18 = sand.u32 1, %s1440_s27  }
 0x30d   : > { %s563_s13 = scalar_lea.sflag [#allocation9], %s562_s18 }
 0x30e   : > { %1021 = dma.done.wait (!%p771_p4), %s563_s13, 256  }
 0x30f   : > { %1023 = vsyncadd (!%p771_p4), %s563_s13, 4294967040  ;;  %s28_s29 = sadd.s32 1, %s1046_s29   ;;  %s1441_s21 = sld [smem:[#allocation15_spill]] }
 0x310   : > { %p25_p10 = scmp.ge.s32.totalorder %s28_s29, 4   ;;  %s1442_s24 = smov %s1030_s25 }
 0x311   : > { %s1443_s25 = smov %s1034_s26  ;;  %s1444_s26 = smov %s1203_s23 }
 0x312   : > { %s1445_s27 = smov %s1042_s28  ;;  %27 = sbr.rel (!%p25_p10) target bundleno = 11 (0xb), region = 124 }
 0x315   : > { %s1446_s28 = smov %s1441_s21 }
 0x319   :  { %577 = vsyncpa [#allocation3], 1 }
 0x31a   :  { %579 = vsyncpa [#allocation3 + $0x1], 1 }
 0x31b   :  { %580 = vsyncpa [#allocation6], 1 }
 0x31c   :  { %581 = vsyncpa [#allocation4], 1 }
 0x31d   :  { %583 = vsyncpa [#allocation4 + $0x1], 1 }
 0x31e   :  { %584 = vsyncpa [#allocation9], 1 }
 0x31f   :  { %586 = vsyncpa [#allocation9 + $0x1], 1 }

</bundles_post_ra>
